<compile_context>
chip_gen: v7x
topology: tpu7x:2x2x1
jax: 0.10.0
libtpu: 0.0.40
codegen_flags: <defaults>
</compile_context>

<pallas_src>
import jax
import jax.numpy as jnp
from jax.experimental import pallas as pl
from jax.experimental.pallas import tpu as pltpu


def _inception_kernel(x_ref, w_ref, b_ref, o_ref):
    # x_ref: (C_pad, T)   channel slab of one batch item for a tile of pixels
    # w_ref: (OC, C_pad)  concatenated 1x1-conv weights of all branches (bf16)
    # b_ref: (OC, 1)      concatenated biases (f32)
    # o_ref: (OC, T)      all branch output channels for this pixel tile
    x = x_ref[...].astype(w_ref.dtype)                        # bf16 MXU operands
    acc = jnp.dot(w_ref[...], x, preferred_element_type=jnp.float32)
    acc = acc + b_ref[...]                                    # broadcast over lanes
    o_ref[...] = jnp.maximum(acc, 0.0).astype(o_ref.dtype)


def _pick_pixel_tile(hw, max_tile):
    """Largest layout-legal tile of the H*W axis (multiple of 128, or the full dim)."""
    if hw <= max_tile:
        return hw                        # full last dim is always layout-legal
    t = (max_tile // 128) * 128
    while t >= 128:
        if hw % t == 0:
            return t
        t -= 128
    return hw                            # fallback: one full-width tile


def inception_block_forward(x_nchw, weights, biases, *,
                            compute_dtype=jnp.bfloat16,
                            out_dtype=None,
                            max_pixels_per_tile=1024):
    """x_nchw: [N, C, H, W].  weights: list of [OC_i, C].  biases: list of [OC_i]."""
    N, C, H, W = x_nchw.shape
    HW = H * W
    if out_dtype is None:
        out_dtype = x_nchw.dtype

    # torch.cat of the branch outputs along channels == row-concat of the
    # branch 1x1-conv weight matrices (and biases).
    w_cat = jnp.concatenate(weights, axis=0).astype(compute_dtype)         # [OC, C]
    b_cat = jnp.concatenate(biases, axis=0).astype(jnp.float32)[:, None]   # [OC, 1]
    OC = w_cat.shape[0]

    # Sublane-dense contraction axis.  Real BN-Inception channel counts are
    # already multiples of 8, so this pad is normally a no-op.
    sub = 8 if x_nchw.dtype == jnp.float32 else 16
    c_extra = -C % sub
    if c_extra:
        x_nchw = jnp.pad(x_nchw, ((0, 0), (0, c_extra), (0, 0), (0, 0)))
        w_cat = jnp.pad(w_cat, ((0, 0), (0, c_extra)))
    C_pad = C + c_extra

    x3 = x_nchw.reshape(N, C_pad, HW)            # free reshape, stays NCHW
    t_hw = _pick_pixel_tile(HW, max_pixels_per_tile)
    grid = (N, HW // t_hw)

    def _call(wb_pipeline_mode):
        extra = {} if wb_pipeline_mode is None else dict(pipeline_mode=wb_pipeline_mode)
        return pl.pallas_call(
            _inception_kernel,
            out_shape=jax.ShapeDtypeStruct((N, OC, HW), out_dtype),
            grid_spec=pltpu.PrefetchScalarGridSpec(
                num_scalar_prefetch=0,
                grid=grid,
                in_specs=[
                    # pixel tile of one batch item (leading batch dim squeezed)
                    pl.BlockSpec((None, C_pad, t_hw), lambda n, j: (n, 0, j)),
                    # resident weight / bias (constant index map -> no re-DMA)
                    pl.BlockSpec((OC, C_pad), lambda n, j: (0, 0), **extra),
                    pl.BlockSpec((OC, 1), lambda n, j: (0, 0), **extra),
                ],
                out_specs=pl.BlockSpec((None, OC, t_hw), lambda n, j: (n, 0, j)),
            ),
            compiler_params=pltpu.CompilerParams(
                dimension_semantics=("parallel", "parallel"),
                vmem_limit_bytes=64 * 1024 * 1024,
            ),
        )(x3, w_cat, b_cat)

    try:
        # Weight/bias never change across the grid -> single-buffer them.
        out3 = _call(pl.Buffered(1))
    except Exception:
        # Fallback for Pallas versions without per-BlockSpec pipeline_mode.
        out3 = _call(None)

    return out3.reshape(N, OC, H, W)             # free reshape, already NCHW


def _init_params(key, in_channels, branch_out_channels):
    """Deterministic synthetic 1x1-conv weights/biases for each branch."""
    weights, biases = [], []
    for oc in branch_out_channels:
        key, kw, kb = jax.random.split(key, 3)
        # PyTorch Conv2d 1x1 weight is [oc, in_c, 1, 1]; squeezed to [oc, in_c].
        weights.append(jax.random.normal(kw, (oc, in_channels), jnp.float32) * 0.1)
        biases.append(jax.random.normal(kb, (oc,), jnp.float32) * 0.1)
    return weights, biases


if __name__ == "__main__":
    key = jax.random.PRNGKey(0)
    N, C, H, W = 2, 4, 16, 16
    branch_out_channels = (8, 16, 8)      # three inception branches -> 32 channels

    kx, kp = jax.random.split(key)
    x = jax.random.normal(kx, (N, C, H, W), jnp.float32)
    weights, biases = _init_params(kp, C, branch_out_channels)

    out = inception_block_forward(x, weights, biases)
    out = jax.block_until_ready(out)
    assert out.shape == (N, sum(branch_out_channels), H, W)

    # Reference 1: emulate the kernel numerics (bf16 operands, f32 accumulate).
    x_flat = jnp.transpose(x, (0, 2, 3, 1)).reshape(N * H * W, C)
    xb = x_flat.astype(jnp.bfloat16).astype(jnp.float32)
    refs_bf, refs_f32 = [], []
    for w_, b_ in zip(weights, biases):
        wb = w_.astype(jnp.bfloat16).astype(jnp.float32)
        refs_bf.append(jnp.maximum(xb @ wb.T + b_[None, :], 0.0))
        refs_f32.append(jnp.maximum(x_flat @ w_.T + b_[None, :], 0.0))
    ref_bf = jnp.concatenate(refs_bf, axis=1).reshape(N, H, W, -1).transpose(0, 3, 1, 2)
    ref_f32 = jnp.concatenate(refs_f32, axis=1).reshape(N, H, W, -1).transpose(0, 3, 1, 2)

    assert jnp.allclose(out, ref_bf, atol=1e-3, rtol=1e-3), \
        float(jnp.max(jnp.abs(out - ref_bf)))
    # Reference 2: exact f32 math, loosened tolerance for the bf16 MXU path.
    assert jnp.allclose(out, ref_f32, atol=7e-2, rtol=7e-2), \
        float(jnp.max(jnp.abs(out - ref_f32)))

    print("KERNEL_OK")
</pallas_src>

<mosaic_0001>
module attributes {stable_mosaic.version = 11 : i64} {
  func.func @_inception_kernel(%arg0: i32, %arg1: i32, %arg2: memref<1x8x256xf32, #tpu.memory_space<vmem>>, %arg3: memref<32x8xbf16, #tpu.memory_space<vmem>>, %arg4: memref<32x1xf32, #tpu.memory_space<vmem>>, %arg5: memref<1x32x256xf32, #tpu.memory_space<vmem>>) attributes {dimension_semantics = [#tpu.dimension_semantics<parallel>, #tpu.dimension_semantics<parallel>], iteration_bounds = array<i64: 2, 1>, scalar_prefetch = 0 : i64, scratch_operands = 0 : i64, tpu.core_type = #tpu.core_type<tc>, window_params = [{transform_indices = @transform_0, window_bounds = array<i64: 1, 8, 256>}, {pipeline_mode = #tpu.pipeline_mode<synchronous>, transform_indices = @transform_1, window_bounds = array<i64: 32, 8>}, {pipeline_mode = #tpu.pipeline_mode<synchronous>, transform_indices = @transform_2, window_bounds = array<i64: 32, 1>}, {transform_indices = @transform_3, window_bounds = array<i64: 1, 32, 256>}]} {
    %c0 = arith.constant 0 : index
    %c0_0 = arith.constant 0 : index
    %c0_1 = arith.constant 0 : index
    %0 = vector.load %arg2[%c0, %c0_0, %c0_1] : memref<1x8x256xf32, #tpu.memory_space<vmem>>, vector<1x8x256xf32>
    %1 = vector.shape_cast %0 : vector<1x8x256xf32> to vector<8x256xf32>
    %2 = arith.truncf %1 : vector<8x256xf32> to vector<8x256xbf16>
    %c0_2 = arith.constant 0 : index
    %c0_3 = arith.constant 0 : index
    %3 = vector.load %arg3[%c0_2, %c0_3] : memref<32x8xbf16, #tpu.memory_space<vmem>>, vector<32x8xbf16>
    %cst = arith.constant dense<0.000000e+00> : vector<32x256xf32>
    %4 = tpu.matmul %3, %2, %cst {dimension_numbers = #tpu.dot_dimension_numbers<[1], [0], [0], [1], [0, 0, 1, 1], [], []>} : vector<32x8xbf16>, vector<8x256xbf16>, vector<32x256xf32> -> vector<32x256xf32>
    %c0_4 = arith.constant 0 : index
    %c0_5 = arith.constant 0 : index
    %5 = vector.load %arg4[%c0_4, %c0_5] : memref<32x1xf32, #tpu.memory_space<vmem>>, vector<32x1xf32>
    %6 = vector.broadcast %5 : vector<32x1xf32> to vector<32x256xf32>
    %7 = arith.addf %4, %6 : vector<32x256xf32>
    %cst_6 = arith.constant 0.000000e+00 : f32
    %8 = vector.broadcast %cst_6 : f32 to vector<32x256xf32>
    %9 = arith.maximumf %7, %8 : vector<32x256xf32>
    %c0_7 = arith.constant 0 : index
    %c0_8 = arith.constant 0 : index
    %c0_9 = arith.constant 0 : index
    %10 = vector.load %arg5[%c0_7, %c0_8, %c0_9] : memref<1x32x256xf32, #tpu.memory_space<vmem>>, vector<1x32x256xf32>
    %11 = vector.shape_cast %10 : vector<1x32x256xf32> to vector<32x256xf32>
    %12 = vector.shape_cast %9 : vector<32x256xf32> to vector<1x32x256xf32>
    tpu.vector_store %arg5[%c0_7, %c0_8, %c0_9], %12 {strides = array<i32>} : memref<1x32x256xf32, #tpu.memory_space<vmem>>, vector<1x32x256xf32>,
    return
  }
  func.func @transform_0(%arg0: i32, %arg1: i32) -> (i32, i32, i32) {
    %c0_i32 = arith.constant 0 : i32
    %c0_i32_0 = arith.constant 0 : i32
    return %arg0, %c0_i32, %arg1 : i32, i32, i32
  }
  func.func @transform_1(%arg0: i32, %arg1: i32) -> (i32, i32) {
    %c0_i32 = arith.constant 0 : i32
    %c0_i32_0 = arith.constant 0 : i32
    %c0_i32_1 = arith.constant 0 : i32
    return %c0_i32, %c0_i32_0 : i32, i32
  }
  func.func @transform_2(%arg0: i32, %arg1: i32) -> (i32, i32) {
    %c0_i32 = arith.constant 0 : i32
    %c0_i32_0 = arith.constant 0 : i32
    %c0_i32_1 = arith.constant 0 : i32
    return %c0_i32, %c0_i32_0 : i32, i32
  }
  func.func @transform_3(%arg0: i32, %arg1: i32) -> (i32, i32, i32) {
    %c0_i32 = arith.constant 0 : i32
    %c0_i32_0 = arith.constant 0 : i32
    return %arg0, %c0_i32, %arg1 : i32, i32, i32
  }
}

module attributes {stable_mosaic.version = 11 : i64} {
  func.func @_inception_kernel(%arg0: i32, %arg1: i32, %arg2: memref<1x8x256xf32, #tpu.memory_space<vmem>>, %arg3: memref<32x8xbf16, #tpu.memory_space<vmem>>, %arg4: memref<32x1xf32, #tpu.memory_space<vmem>>, %arg5: memref<1x32x256xf32, #tpu.memory_space<vmem>>) attributes {dimension_semantics = [#tpu.dimension_semantics<parallel>, #tpu.dimension_semantics<parallel>], iteration_bounds = array<i64: 2, 1>, scalar_prefetch = 0 : i64, scratch_operands = 0 : i64, tpu.core_type = #tpu.core_type<tc>, window_params = [{transform_indices = @transform_0, window_bounds = array<i64: 1, 8, 256>}, {pipeline_mode = #tpu.pipeline_mode<synchronous>, transform_indices = @transform_1, window_bounds = array<i64: 32, 8>}, {pipeline_mode = #tpu.pipeline_mode<synchronous>, transform_indices = @transform_2, window_bounds = array<i64: 32, 1>}, {transform_indices = @transform_3, window_bounds = array<i64: 1, 32, 256>}]} {
    %c0 = arith.constant 0 : index
    %c0_0 = arith.constant 0 : index
    %c0_1 = arith.constant 0 : index
    %0 = vector.load %arg2[%c0, %c0_0, %c0_1] : memref<1x8x256xf32, #tpu.memory_space<vmem>>, vector<1x8x256xf32>
    %1 = vector.shape_cast %0 : vector<1x8x256xf32> to vector<8x256xf32>
    %2 = arith.truncf %1 : vector<8x256xf32> to vector<8x256xbf16>
    %c0_2 = arith.constant 0 : index
    %c0_3 = arith.constant 0 : index
    %3 = vector.load %arg3[%c0_2, %c0_3] : memref<32x8xbf16, #tpu.memory_space<vmem>>, vector<32x8xbf16>
    %cst = arith.constant dense<0.000000e+00> : vector<32x256xf32>
    %4 = tpu.matmul %3, %2, %cst {dimension_numbers = #tpu.dot_dimension_numbers<[1], [0], [0], [1], [0, 0, 1, 1], [], []>} : vector<32x8xbf16>, vector<8x256xbf16>, vector<32x256xf32> -> vector<32x256xf32>
    %c0_4 = arith.constant 0 : index
    %c0_5 = arith.constant 0 : index
    %5 = vector.load %arg4[%c0_4, %c0_5] : memref<32x1xf32, #tpu.memory_space<vmem>>, vector<32x1xf32>
    %6 = vector.broadcast %5 : vector<32x1xf32> to vector<32x256xf32>
    %7 = arith.addf %4, %6 : vector<32x256xf32>
    %cst_6 = arith.constant 0.000000e+00 : f32
    %8 = vector.broadcast %cst_6 : f32 to vector<32x256xf32>
    %9 = arith.maximumf %7, %8 : vector<32x256xf32>
    %c0_7 = arith.constant 0 : index
    %c0_8 = arith.constant 0 : index
    %c0_9 = arith.constant 0 : index
    %10 = vector.load %arg5[%c0_7, %c0_8, %c0_9] : memref<1x32x256xf32, #tpu.memory_space<vmem>>, vector<1x32x256xf32>
    %11 = vector.shape_cast %10 : vector<1x32x256xf32> to vector<32x256xf32>
    %12 = vector.shape_cast %9 : vector<32x256xf32> to vector<1x32x256xf32>
    tpu.vector_store %arg5[%c0_7, %c0_8, %c0_9], %12 {strides = array<i32>} : memref<1x32x256xf32, #tpu.memory_space<vmem>>, vector<1x32x256xf32>,
    return
  }
  func.func @transform_0(%arg0: i32, %arg1: i32) -> (i32, i32, i32) {
    %c0_i32 = arith.constant 0 : i32
    %c0_i32_0 = arith.constant 0 : i32
    return %arg0, %c0_i32, %arg1 : i32, i32, i32
  }
  func.func @transform_1(%arg0: i32, %arg1: i32) -> (i32, i32) {
    %c0_i32 = arith.constant 0 : i32
    %c0_i32_0 = arith.constant 0 : i32
    %c0_i32_1 = arith.constant 0 : i32
    return %c0_i32, %c0_i32_0 : i32, i32
  }
  func.func @transform_2(%arg0: i32, %arg1: i32) -> (i32, i32) {
    %c0_i32 = arith.constant 0 : i32
    %c0_i32_0 = arith.constant 0 : i32
    %c0_i32_1 = arith.constant 0 : i32
    return %c0_i32, %c0_i32_0 : i32, i32
  }
  func.func @transform_3(%arg0: i32, %arg1: i32) -> (i32, i32, i32) {
    %c0_i32 = arith.constant 0 : i32
    %c0_i32_0 = arith.constant 0 : i32
    return %arg0, %c0_i32, %arg1 : i32, i32, i32
  }
}

</mosaic_0001>

<bundles_post_ra>
// kernel: tpu_custom_call.1
= control target key start
LH: loop header
LB: loop body
LE: loop exit
PB: predicated region body
PF: predicated region fallthrough
CT: control target
= control target key end

     0   :  { %8 = vsyncpa [#allocation3], 0  ;;  %s1075_s0 = inlined_call_operand.hbm [shape: f32[2,8,256], index: 0, kind: input, shape index: {}]   ;;  %s1076_s1 = inlined_call_operand.hbm [shape: bf16[32,8], index: 1, kind: input, shape index: {}]   ;;  %s1077_s2 = inlined_call_operand.hbm [shape: f32[32,1], index: 2, kind: input, shape index: {}]   ;;  %s1078_s3 = inlined_call_operand.hbm [shape: f32[2,32,256], index: 3, kind: output, shape index: {}]  }
   0x1   :  { %10 = vsyncpa [#allocation3 + $0x1], 0 }
   0x2   :  { %11 = vsyncpa [#allocation6], 0 }
   0x3   :  { %12 = vsyncpa [#allocation4], 0 }
   0x4   :  { %14 = vsyncpa [#allocation4 + $0x1], 0  ;;  %s811_s12 = smov 0   ;;  %s813_s13 = smov 0  }
   0x5   :  { %s815_s14 = smov 0   ;;  %s817_s15 = smov 0  }
   0x6   :  { %s819_s16 = smov 0   ;;  %s821_s17 = smov 0  }
   0x7 LB: > { %s484_s18 = sadd.s32 4294967295, %s778_s17   ;;  %s485_s19 = sadd.s32 4294967294, %s778_s17   ;;  %s778_s17 = sphi %s821_s17, %s20_s17   ;;  %s774_s16 = sphi %s819_s16, %s1100_s16   ;;  %s770_s15 = sphi %s817_s15, %s1099_s15   ;;  %s766_s14 = sphi %s815_s14, %s1098_s14   ;;  %s762_s13 = sphi %s813_s13, %s1097_s13   ;;  %s758_s12 = sphi %s811_s12, %s1096_s12  }
   0x8   : > { %p54_p0 = scmp.ne.s32.totalorder %s762_s13, %s758_s12  ;;  %p845_p1 = scmp.eq.s32.totalorder %s484_s18, 0 }
   0x9   : > { %p849_p2 = scmp.eq.s32.totalorder %s484_s18, 1  ;;  %p128_p3 = scmp.eq.s32.totalorder %s485_s19, 1 }
   0xa   : > { %s1083_s20 = scalar_select %p845_p1, 1, 0 }
   0xb   : > { %p855_p4 = por %p845_p1, %p54_p0  ;;  %p486_p5 = scmp.ge.s32.totalorder %s778_s17, 1 }
   0xc   : > { %p860_p6 = por %p128_p3, %p54_p0  ;;  %p135_p7 = scmp.lt.s32.totalorder %s778_s17, 3 }
   0xd   : > { %s1085_s22 = scalar_select %p855_p4, 1, 0 }
   0xe   : > { %s1086_s23 = scalar_select %p860_p6, 1, 0 }
   0xf   : > { %p865_p8 = pnand %p486_p5, %p135_p7  ;;  %s780_s25 = smov [#allocation5]  }
  0x10   : > { %s147_s26 = sshll.u32 %s780_s25, 4  ;;  %s781_s28 = smov [#allocation7]   ;;  %s869_s26 = int_to_ptr.vmem [resolvable:$true] %s147_s26 }
  0x11   : > { %p524_p9 = pneg %p865_p8  ;;  %s160_s29 = sshll.u32 %s781_s28, 4  ;;  %s880_s29 = int_to_ptr.vmem [resolvable:$true] %s160_s29 }
  0x12   : > { %s606_s5 = scalar_lea.hbm %s1076_s1, 256 }
  0x13   : > { %p876_p11 = pnand %p524_p9, %p845_p1  ;;  %p607_p12 = scmp.ne.s32.totalorder %s1076_s1, %s606_s5 }
  0x14   : > { %p613_p5 = scmp.lt.u32.totalorder %s606_s5, %s1076_s1 }
  0x15   : > { %p608_p13 = pneg %p876_p11 }
  0x17   : > { %p609_p0 = pnand %p608_p13, %p607_p12 }
  0x19   : > { %p610_p3 = pneg %p609_p0 }
  0x1b   : > { %p615_p7 = pnand %p613_p5, %p610_p3 }
  0x1d   : > { %618 = shalt.err (!%p615_p7)
}
  0x1e   : > { %s619_s10 = scalar_lea.vmem %s869_s26, 256  ;;  %p627_p1 = scmp.lt.s32.totalorder %s869_s26, %s869_s26 }
  0x1f   : > { %p620_p9 = scmp.ne.s32.totalorder %s869_s26, %s619_s10  ;;  %p628_p12 = scmp.lt.s32.totalorder %s619_s10, %s619_s10 }
  0x21   : > { %p622_p10 = pnand %p620_p9, %p608_p13  ;;  %p629_p0 = por %p628_p12, %p627_p1 }
  0x23   : > { %p623_p6 = pneg %p622_p10 }
  0x25   : > { %p630_p4 = pnand %p629_p0, %p623_p6 }
  0x27   : > { %633 = shalt.err (!%p630_p4)
}
  0x28   : > { %s782_s11 = smov 64   ;;  %s783_s18 = smov 4  }
  0x29   : > { %527 = dma.hbm_to_vmem [thread:$0]  (!%p876_p11), %s1076_s1, 256, %s869_s26, [#allocation6], %s782_s11, %s782_s11, %s783_s18  }
  0x2a   : > { %s634_s4 = scalar_lea.hbm %s1077_s2, 512 }
  0x2b   : > { %p635_p1 = scmp.ne.s32.totalorder %s1077_s2, %s634_s4  ;;  %p641_p10 = scmp.lt.u32.totalorder %s634_s4, %s1077_s2 }
  0x2d   : > { %p637_p4 = pnand %p635_p1, %p608_p13 }
  0x2f   : > { %p638_p6 = pneg %p637_p4 }
  0x31   : > { %p643_p3 = pnand %p641_p10, %p638_p6 }
  0x33   : > { %646 = shalt.err (!%p643_p3)
}
  0x34   : > { %s647_s26 = scalar_lea.vmem %s880_s29, 512  ;;  %p655_p12 = scmp.lt.s32.totalorder %s880_s29, %s880_s29 }
  0x35   : > { %p648_p5 = scmp.ne.s32.totalorder %s880_s29, %s647_s26  ;;  %p656_p0 = scmp.lt.s32.totalorder %s647_s26, %s647_s26 }
  0x37   : > { %p650_p7 = pnand %p648_p5, %p608_p13  ;;  %p657_p1 = por %p656_p0, %p655_p12 }
  0x39   : > { %p651_p9 = pneg %p650_p7 }
  0x3b   : > { %p658_p4 = pnand %p657_p1, %p651_p9 }
  0x3d   : > { %661 = shalt.err (!%p658_p4)
}
  0x3e   : > { %s784_s9 = smov 128   ;;  %s785_s10 = smov 8  }
  0x3f   : > { %530 = dma.hbm_to_vmem [thread:$0]  (!%p876_p11), %s1077_s2, 512, %s880_s29, [#allocation6], %s784_s9, %s784_s9, %s785_s10  }
  0x40   : > { %s32_s19 = sadd.s32 1, %s774_s16  ;;  %s41_s25 = sadd.s32 1, %s766_s14 }
  0x41   : > { %p34_p13 = scmp.ge.s32.totalorder %s32_s19, 2  ;;  %p48_p6 = scmp.ne.s32.totalorder %s766_s14, %s762_s13 }
  0x42   : > { %p49_p10 = scmp.eq.s32.totalorder %s778_s17, 0  ;;  %p541_p3 = scmp.lt.s32.totalorder %s778_s17, 2 }
  0x43   : > { %s1102_s19 = smov (%p34_p13, %s32_s19), 0  ;;  %p944_p7 = por %p849_p2, %p48_p6 }
  0x44   : > { %p50_p5 = por %p49_p10, %p48_p6  ;;  %s36_s27 = ssub.s32 %s774_s16, %s1102_s19 }
  0x45   : > { %s1089_s28 = scalar_select %p944_p7, 1, 0 }
  0x46   : > { %s174_s30 = sand.u32 1, %s766_s14   ;;  %p39_p9 = scmp.eq.s32.totalorder %s36_s27, 0 }
  0x47   : > { %s490_s29 = sshll.u32 %s174_s30, 4  ;;  %s508_s4 = sshll.u32 %s774_s16, 8 }
  0x48   : > { %s953_s5 = scalar_select %p39_p9, %s766_s14, %s41_s25  }
  0x49   : > { %s958_s8 = scalar_lea.hbm %s1075_s0, %s508_s4  ;;  %s178_s21 = scalar_lea.vmem [#allocation2], %s490_s29 }
  0x4a   : > { %s188_s26 = sshll.u32 %s178_s21, 4  ;;  %p962_p2 = pnand %p541_p3, %p50_p5  ;;  %s966_s26 = int_to_ptr.vmem [resolvable:$true] %s188_s26 }
  0x4b   : > { %s175_s10 = scalar_lea.sflag [#allocation3], %s174_s30  ;;  %s662_s11 = scalar_lea.hbm %s958_s8, 256 }
  0x4c   : > { %p663_p11 = scmp.ne.s32.totalorder %s958_s8, %s662_s11  ;;  %p664_p12 = pneg %p962_p2 }
  0x4d   : > { %s667_s27 = scalar_lea.hbm %s1075_s0, 512  ;;  %p668_p4 = scmp.lt.u32.totalorder %s958_s8, %s1075_s0 }
  0x4e   : > { %p665_p0 = pnand %p664_p12, %p663_p11  ;;  %p669_p13 = scmp.lt.u32.totalorder %s667_s27, %s662_s11 }
  0x4f   : > { %p671_p10 = scmp.lt.u32.totalorder %s662_s11, %s958_s8 }
  0x50   : > { %p666_p1 = pneg %p665_p0  ;;  %p670_p6 = por %p669_p13, %p668_p4 }
  0x52   : > { %p672_p3 = por %p671_p10, %p670_p6 }
  0x54   : > { %p673_p5 = pnand %p672_p3, %p666_p1 }
  0x56   : > { %676 = shalt.err (!%p673_p5)
}
  0x57   : > { %s677_s30 = scalar_lea.vmem %s966_s26, 256  ;;  %s786_s6 = smov [#allocation2]  }
  0x58   : > { %p678_p9 = scmp.ne.s32.totalorder %s966_s26, %s677_s30  ;;  %s682_s7 = sshll.u32 %s786_s6, 4  ;;  %s683_s7 = int_to_ptr.vmem [resolvable:$false] %s682_s7 }
  0x59   : > { %s684_s21 = scalar_lea.vmem %s683_s7, 512  ;;  %p685_p7 = scmp.lt.s32.totalorder %s966_s26, %s683_s7 }
  0x5a   : > { %p680_p11 = pnand %p678_p9, %p664_p12  ;;  %p686_p4 = scmp.lt.s32.totalorder %s684_s21, %s677_s30 }
  0x5c   : > { %p681_p0 = pneg %p680_p11  ;;  %p687_p13 = por %p686_p4, %p685_p7 }
  0x5e   : > { %p688_p6 = pnand %p687_p13, %p681_p0 }
  0x60   : > { %691 = shalt.err (!%p688_p6)
}
  0x61   : > { %534 = dma.hbm_to_vmem [thread:$0]  (!%p962_p2), %s958_s8, 256, %s966_s26, %s175_s10  }
  0x62   : > { %197 = sbr.rel (%p865_p8) target bundleno = 350 (0x15e), region = 32  ;;  %s996_s11 = sand.u32 (!%p865_p8), 1, %s762_s13  }
  0x63   : > { %s494_s18 = sshll.u32 (!%p865_p8), %s996_s11, 4  ;;  %s200_s25 = scalar_lea.sflag (!%p865_p8), [#allocation3], %s996_s11 }
  0x64   : > { %s203_s27 = scalar_lea.vmem (!%p865_p8), [#allocation2], %s494_s18  ;;  %p1091_p7 = scmp.ne.s32.totalorder (!%p865_p8), %s1085_s22, 0 }
  0x69   : > { %745 = dma.done.wait (%p1091_p7), %s200_s25, 256  }
  0x6a   : > { %747 = vsyncadd (%p1091_p7), %s200_s25, 4294967040  ;;  %p1092_p12 = scmp.ne.s32.totalorder %s1083_s20, 0 }
  0x6c   : > { %749 = dma.done.wait (%p1092_p12), [#allocation6], 768  }
  0x6d   : > { %751 = vsyncadd (%p1092_p12), [#allocation6], 4294966528  ;;  %v787_v0 = vmov 0   ;;  %v238_v1 = vld [vmem:[%s203_s27 + $0x8] sm:$0xff]  ;;  %vm286_vm0 = vcmask 1043456   ;;  %v237_v2 = vld [vmem:[%s203_s27] sm:$0xff] }
  0x6e   : > { %325 = vmatprep.mubr.bf16.mxu0 %v787_v0  ;;  %335 = vmatprep.mubr.bf16.mxu1 %v787_v0  ;;  %v240_v3 = vpack.c.bf16 %v238_v1, %v238_v1  ;;  %v239_v4 = vpack.c.bf16 %v237_v2, %v237_v2  ;;  %v247_v5 = vld [vmem:[#allocation7 + $0x10] sm:$0xff]  ;;  %v605_v8 = vld [vmem:[#allocation5 + $0x8] sm:$0xff]   ;;  %v245_v9 = vld [vmem:[#allocation7] sm:$0xff]  ;;  %vm279_vm1 = vcmask 64512   ;;  %s497_s20 = sshll.u32 %s996_s11, 6  ;;  %s509_s8 = sshll.u32 %s770_s15, 10 }
  0x6f   : > { %603 = vset.pattern.permute.xlu1 %v787_v0  ;;  %602 = vset.pattern.permute.xlu0 %v787_v0  ;;  %v604_v7 = vld [vmem:[#allocation5] sm:$0xff]   ;;  %v248_v10 = vld [vmem:[#allocation7 + $0x18] sm:$0xff]  ;;  %v246_v11 = vld [vmem:[#allocation7 + $0x8] sm:$0xff]  ;;  %s1009_s22 = scalar_lea.vmem [#allocation8], %s497_s20  ;;  %s1020_s9 = scalar_lea.hbm %s1078_s3, %s509_s8 }
  0x70   : > { %500 = vmatprep.subr.msk.bf16.mxu0 %vm286_vm0, %v240_v3  ;;  %510 = vmatprep.subr.msk.bf16.mxu1 %vm286_vm0, %v240_v3  ;;  %v288_v6 = vsel %vm286_vm0, %v239_v4, 0  ;;  %s378_s24 = sshll.u32 %s1009_s22, 4  ;;  %s363_s10 = scalar_lea.sflag [#allocation4], %s996_s11  ;;  %s1013_s24 = int_to_ptr.vmem [resolvable:$true] %s378_s24 }
  0x71   : > { %294 = vmatpush1.bf16.msra.mxu0 %v288_v6  ;;  %511 = vmatpush1.bf16.msra.mxu1 %v288_v6  ;;  %s692_s29 = scalar_lea.vmem %s1013_s24, 1024  ;;  %p1093_p2 = scmp.ne.s32.totalorder %s1089_s28, 0 }
  0x72   : > { %261 = vperm.xlu1 %603, %v247_v5   ;;  %251 = vperm.xlu0 %602, %v245_v9   ;;  %p693_p8 = scmp.ne.s32.totalorder %s1013_s24, %s692_s29  ;;  %s788_s4 = smov [#allocation8]  }
  0x73   : > { %s696_s30 = sshll.u32 %s788_s4, 4  ;;  %s697_s30 = int_to_ptr.vmem [resolvable:$false] %s696_s30 }
  0x74   : > { %501 = vmatmul.mubr.msk.bf16.vlgmr.msra.gmra.mrb[0].mxu0 %vm279_vm1, %v604_v7  ;;  %502 = vmatmul.mubr.msk.bf16.vlgmr.msra.gmra.mrb[0].mxu1 %vm279_vm1, %v605_v8  ;;  %p694_p1 = pnand %p693_p8, %p1093_p2  ;;  %s698_s6 = scalar_lea.vmem %s697_s30, 2048 }
  0x75   : > { %p699_p3 = scmp.lt.s32.totalorder %s1013_s24, %s697_s30  ;;  %p700_p5 = scmp.lt.s32.totalorder %s698_s6, %s692_s29 }
  0x76   : > { %266 = vperm.xlu1 %603, %v248_v10   ;;  %256 = vperm.xlu0 %602, %v246_v11   ;;  %p695_p10 = pneg %p694_p1 }
  0x77   : > { %p701_p9 = por %p700_p5, %p699_p3 }
  0x79   : > { %p702_p11 = pnand %p701_p9, %p695_p10 }
  0xf1   : > { %v262_v12 = vpop.permute.xlu1 %261  ;;  %v252_v13 = vpop.permute.xlu0 %251 }
  0xf5   : > { %v267_v14 = vpop.permute.xlu1 %266  ;;  %v257_v15 = vpop.permute.xlu0 %256 }
 0x147   : > { %v327_v16 = vpop.f32.mrb[0].mxu0  ;;  %v337_v17 = vpop.f32.mrb[0].mxu1 }
 0x148   : > { %v328_v18 = vadd.f32 %v327_v16, %v252_v13  ;;  %v338_v19 = vadd.f32 %v337_v17, %v262_v12  ;;  %v329_v20 = vpop.f32.mrb[1].mxu0  ;;  %v339_v21 = vpop.f32.mrb[1].mxu1 }
 0x149   : > { %v330_v22 = vadd.f32 %v329_v20, %v252_v13  ;;  %v340_v23 = vadd.f32 %v339_v21, %v262_v12  ;;  %v331_v24 = vpop.f32.mrb[2].mxu0  ;;  %v341_v25 = vpop.f32.mrb[2].mxu1 }
 0x14a   : > { %v346_v26 = vmax.f32 %v328_v18, 0.0  ;;  %v350_v27 = vmax.f32 %v338_v19, 0.0  ;;  %v332_v28 = vadd.f32 %v331_v24, %v257_v15  ;;  %v342_v29 = vadd.f32 %v341_v25, %v267_v14  ;;  %v333_v30 = vpop.f32.mrb[3].mxu0  ;;  %v343_v31 = vpop.f32.mrb[3].mxu1 }
 0x14b   : > { %v347_v32 = vmax.f32 %v330_v22, 0.0  ;;  %v351_v33 = vmax.f32 %v340_v23, 0.0  ;;  %v334_v34 = vadd.f32 %v333_v30, %v257_v15  ;;  %v344_v35 = vadd.f32 %v343_v31, %v267_v14 }
 0x14c   : > { %354 = vst [vmem:[%s1009_s22] sm:$0xff] %v346_v26  ;;  %358 = vst [vmem:[%s1009_s22 + $0x20] sm:$0xff] %v350_v27  ;;  %v348_v36 = vmax.f32 %v332_v28, 0.0  ;;  %v352_v37 = vmax.f32 %v342_v29, 0.0 }
 0x14d   : > { %355 = vst [vmem:[%s1009_s22 + $0x8] sm:$0xff] %v347_v32  ;;  %359 = vst [vmem:[%s1009_s22 + $0x28] sm:$0xff] %v351_v33  ;;  %v349_v38 = vmax.f32 %v334_v34, 0.0  ;;  %v353_v39 = vmax.f32 %v344_v35, 0.0 }
 0x14e   : > { %356 = vst [vmem:[%s1009_s22 + $0x10] sm:$0xff] %v348_v36  ;;  %360 = vst [vmem:[%s1009_s22 + $0x30] sm:$0xff] %v352_v37 }
 0x14f   : > { %357 = vst [vmem:[%s1009_s22 + $0x18] sm:$0xff] %v349_v38  ;;  %361 = vst [vmem:[%s1009_s22 + $0x38] sm:$0xff] %v353_v39 }
 0x150   : > { %705 = shalt.err (!%p702_p11)
}
 0x151   : > { %s706_s7 = scalar_lea.hbm %s1020_s9, 1024  ;;  %s710_s25 = scalar_lea.hbm %s1078_s3, 2048 }
 0x152   : > { %p707_p0 = scmp.ne.s32.totalorder %s1020_s9, %s706_s7  ;;  %p711_p6 = scmp.lt.u32.totalorder %s1020_s9, %s1078_s3 }
 0x153   : > { %p712_p7 = scmp.lt.u32.totalorder %s710_s25, %s706_s7  ;;  %p714_p8 = scmp.lt.u32.totalorder %s706_s7, %s1020_s9 }
 0x154   : > { %p708_p4 = pnand %p707_p0, %p1093_p2 }
 0x155   : > { %p713_p12 = por %p712_p7, %p711_p6 }
 0x156   : > { %p709_p13 = pneg %p708_p4 }
 0x157   : > { %p715_p1 = por %p714_p8, %p713_p12 }
 0x159   : > { %p716_p10 = pnand %p715_p1, %p709_p13 }
 0x15b   : > { %719 = shalt.err (!%p716_p10)
}
 0x15c   : > { %s789_s22 = smov 256   ;;  %s790_s8 = smov 16  }
 0x15d   : > { %522 = dma.vmem_to_hbm [thread:$0]  (%p1093_p2), %s1013_s24, 1024, %s1020_s9, %s363_s10, %s789_s22, %s789_s22, %s790_s8  }
 0x15e PF: > { %s393_s15 = sand.u32 1, %s758_s12   ;;  %p1094_p3 = scmp.ne.s32.totalorder %s1086_s23, 0 }
 0x15f   : > { %p1095_p5 = scmp.ge.s32.totalorder %s778_s17, 2  ;;  %s394_s26 = scalar_lea.sflag [#allocation4], %s393_s15 }
 0x161   : > { %p536_p9 = pnand %p1095_p5, %p1094_p3 }
 0x163   : > { %753 = dma.done.wait (!%p536_p9), %s394_s26, 1024  }
 0x164   : > { %755 = vsyncadd (!%p536_p9), %s394_s26, 4294966272  ;;  %s20_s17 = sadd.s32 1, %s778_s17   ;;  %s1096_s12 = smov %s762_s13 }
 0x165   : > { %p17_p11 = scmp.ge.s32.totalorder %s20_s17, 4   ;;  %s1097_s13 = smov %s766_s14 }
 0x166   : > { %s1098_s14 = smov %s953_s5  ;;  %s1099_s15 = smov %s774_s16 }
 0x167   : > { %s1100_s16 = smov %s1102_s19  ;;  %19 = sbr.rel (!%p17_p11) target bundleno = 7 (0x7), region = 85 }
 0x16e   :  { %399 = vsyncpa [#allocation3], 1 }
 0x16f   :  { %401 = vsyncpa [#allocation3 + $0x1], 1 }
 0x170   :  { %402 = vsyncpa [#allocation6], 1 }
 0x171   :  { %403 = vsyncpa [#allocation4], 1 }
 0x172   :  { %405 = vsyncpa [#allocation4 + $0x1], 1 }

// kernel: tpu_custom_call.1
= control target key start
LH: loop header
LB: loop body
LE: loop exit
PB: predicated region body
PF: predicated region fallthrough
CT: control target
= control target key end

     0   :  { %8 = vsyncpa [#allocation3], 0  ;;  %s1075_s0 = inlined_call_operand.hbm [shape: f32[2,8,256], index: 0, kind: input, shape index: {}]   ;;  %s1076_s1 = inlined_call_operand.hbm [shape: bf16[32,8], index: 1, kind: input, shape index: {}]   ;;  %s1077_s2 = inlined_call_operand.hbm [shape: f32[32,1], index: 2, kind: input, shape index: {}]   ;;  %s1078_s3 = inlined_call_operand.hbm [shape: f32[2,32,256], index: 3, kind: output, shape index: {}]  }
   0x1   :  { %10 = vsyncpa [#allocation3 + $0x1], 0 }
   0x2   :  { %11 = vsyncpa [#allocation6], 0 }
   0x3   :  { %12 = vsyncpa [#allocation4], 0 }
   0x4   :  { %14 = vsyncpa [#allocation4 + $0x1], 0  ;;  %s811_s12 = smov 0   ;;  %s813_s13 = smov 0  }
   0x5   :  { %s815_s14 = smov 0   ;;  %s817_s15 = smov 0  }
   0x6   :  { %s819_s16 = smov 0   ;;  %s821_s17 = smov 0  }
   0x7 LB: > { %s484_s18 = sadd.s32 4294967295, %s778_s17   ;;  %s485_s19 = sadd.s32 4294967294, %s778_s17   ;;  %s778_s17 = sphi %s821_s17, %s20_s17   ;;  %s774_s16 = sphi %s819_s16, %s1100_s16   ;;  %s770_s15 = sphi %s817_s15, %s1099_s15   ;;  %s766_s14 = sphi %s815_s14, %s1098_s14   ;;  %s762_s13 = sphi %s813_s13, %s1097_s13   ;;  %s758_s12 = sphi %s811_s12, %s1096_s12  }
   0x8   : > { %p54_p0 = scmp.ne.s32.totalorder %s762_s13, %s758_s12  ;;  %p845_p1 = scmp.eq.s32.totalorder %s484_s18, 0 }
   0x9   : > { %p849_p2 = scmp.eq.s32.totalorder %s484_s18, 1  ;;  %p128_p3 = scmp.eq.s32.totalorder %s485_s19, 1 }
   0xa   : > { %s1083_s20 = scalar_select %p845_p1, 1, 0 }
   0xb   : > { %p855_p4 = por %p845_p1, %p54_p0  ;;  %p486_p5 = scmp.ge.s32.totalorder %s778_s17, 1 }
   0xc   : > { %p860_p6 = por %p128_p3, %p54_p0  ;;  %p135_p7 = scmp.lt.s32.totalorder %s778_s17, 3 }
   0xd   : > { %s1085_s22 = scalar_select %p855_p4, 1, 0 }
   0xe   : > { %s1086_s23 = scalar_select %p860_p6, 1, 0 }
   0xf   : > { %p865_p8 = pnand %p486_p5, %p135_p7  ;;  %s780_s25 = smov [#allocation5]  }
  0x10   : > { %s147_s26 = sshll.u32 %s780_s25, 4  ;;  %s781_s28 = smov [#allocation7]   ;;  %s869_s26 = int_to_ptr.vmem [resolvable:$true] %s147_s26 }
  0x11   : > { %p524_p9 = pneg %p865_p8  ;;  %s160_s29 = sshll.u32 %s781_s28, 4  ;;  %s880_s29 = int_to_ptr.vmem [resolvable:$true] %s160_s29 }
  0x12   : > { %s606_s5 = scalar_lea.hbm %s1076_s1, 256 }
  0x13   : > { %p876_p11 = pnand %p524_p9, %p845_p1  ;;  %p607_p12 = scmp.ne.s32.totalorder %s1076_s1, %s606_s5 }
  0x14   : > { %p613_p5 = scmp.lt.u32.totalorder %s606_s5, %s1076_s1 }
  0x15   : > { %p608_p13 = pneg %p876_p11 }
  0x17   : > { %p609_p0 = pnand %p608_p13, %p607_p12 }
  0x19   : > { %p610_p3 = pneg %p609_p0 }
  0x1b   : > { %p615_p7 = pnand %p613_p5, %p610_p3 }
  0x1d   : > { %618 = shalt.err (!%p615_p7)
}
  0x1e   : > { %s619_s10 = scalar_lea.vmem %s869_s26, 256  ;;  %p627_p1 = scmp.lt.s32.totalorder %s869_s26, %s869_s26 }
  0x1f   : > { %p620_p9 = scmp.ne.s32.totalorder %s869_s26, %s619_s10  ;;  %p628_p12 = scmp.lt.s32.totalorder %s619_s10, %s619_s10 }
  0x21   : > { %p622_p10 = pnand %p620_p9, %p608_p13  ;;  %p629_p0 = por %p628_p12, %p627_p1 }
  0x23   : > { %p623_p6 = pneg %p622_p10 }
  0x25   : > { %p630_p4 = pnand %p629_p0, %p623_p6 }
  0x27   : > { %633 = shalt.err (!%p630_p4)
}
  0x28   : > { %s782_s11 = smov 64   ;;  %s783_s18 = smov 4  }
  0x29   : > { %527 = dma.hbm_to_vmem [thread:$0]  (!%p876_p11), %s1076_s1, 256, %s869_s26, [#allocation6], %s782_s11, %s782_s11, %s783_s18  }
  0x2a   : > { %s634_s4 = scalar_lea.hbm %s1077_s2, 512 }
  0x2b   : > { %p635_p1 = scmp.ne.s32.totalorder %s1077_s2, %s634_s4  ;;  %p641_p10 = scmp.lt.u32.totalorder %s634_s4, %s1077_s2 }
  0x2d   : > { %p637_p4 = pnand %p635_p1, %p608_p13 }
  0x2f   : > { %p638_p6 = pneg %p637_p4 }
  0x31   : > { %p643_p3 = pnand %p641_p10, %p638_p6 }
  0x33   : > { %646 = shalt.err (!%p643_p3)
}
  0x34   : > { %s647_s26 = scalar_lea.vmem %s880_s29, 512  ;;  %p655_p12 = scmp.lt.s32.totalorder %s880_s29, %s880_s29 }
  0x35   : > { %p648_p5 = scmp.ne.s32.totalorder %s880_s29, %s647_s26  ;;  %p656_p0 = scmp.lt.s32.totalorder %s647_s26, %s647_s26 }
  0x37   : > { %p650_p7 = pnand %p648_p5, %p608_p13  ;;  %p657_p1 = por %p656_p0, %p655_p12 }
  0x39   : > { %p651_p9 = pneg %p650_p7 }
  0x3b   : > { %p658_p4 = pnand %p657_p1, %p651_p9 }
  0x3d   : > { %661 = shalt.err (!%p658_p4)
}
  0x3e   : > { %s784_s9 = smov 128   ;;  %s785_s10 = smov 8  }
  0x3f   : > { %530 = dma.hbm_to_vmem [thread:$0]  (!%p876_p11), %s1077_s2, 512, %s880_s29, [#allocation6], %s784_s9, %s784_s9, %s785_s10  }
  0x40   : > { %s32_s19 = sadd.s32 1, %s774_s16  ;;  %s41_s25 = sadd.s32 1, %s766_s14 }
  0x41   : > { %p34_p13 = scmp.ge.s32.totalorder %s32_s19, 2  ;;  %p48_p6 = scmp.ne.s32.totalorder %s766_s14, %s762_s13 }
  0x42   : > { %p49_p10 = scmp.eq.s32.totalorder %s778_s17, 0  ;;  %p541_p3 = scmp.lt.s32.totalorder %s778_s17, 2 }
  0x43   : > { %s1102_s19 = smov (%p34_p13, %s32_s19), 0  ;;  %p944_p7 = por %p849_p2, %p48_p6 }
  0x44   : > { %p50_p5 = por %p49_p10, %p48_p6  ;;  %s36_s27 = ssub.s32 %s774_s16, %s1102_s19 }
  0x45   : > { %s1089_s28 = scalar_select %p944_p7, 1, 0 }
  0x46   : > { %s174_s30 = sand.u32 1, %s766_s14   ;;  %p39_p9 = scmp.eq.s32.totalorder %s36_s27, 0 }
  0x47   : > { %s490_s29 = sshll.u32 %s174_s30, 4  ;;  %s508_s4 = sshll.u32 %s774_s16, 8 }
  0x48   : > { %s953_s5 = scalar_select %p39_p9, %s766_s14, %s41_s25  }
  0x49   : > { %s958_s8 = scalar_lea.hbm %s1075_s0, %s508_s4  ;;  %s178_s21 = scalar_lea.vmem [#allocation2], %s490_s29 }
  0x4a   : > { %s188_s26 = sshll.u32 %s178_s21, 4  ;;  %p962_p2 = pnand %p541_p3, %p50_p5  ;;  %s966_s26 = int_to_ptr.vmem [resolvable:$true] %s188_s26 }
  0x4b   : > { %s175_s10 = scalar_lea.sflag [#allocation3], %s174_s30  ;;  %s662_s11 = scalar_lea.hbm %s958_s8, 256 }
  0x4c   : > { %p663_p11 = scmp.ne.s32.totalorder %s958_s8, %s662_s11  ;;  %p664_p12 = pneg %p962_p2 }
  0x4d   : > { %s667_s27 = scalar_lea.hbm %s1075_s0, 512  ;;  %p668_p4 = scmp.lt.u32.totalorder %s958_s8, %s1075_s0 }
  0x4e   : > { %p665_p0 = pnand %p664_p12, %p663_p11  ;;  %p669_p13 = scmp.lt.u32.totalorder %s667_s27, %s662_s11 }
  0x4f   : > { %p671_p10 = scmp.lt.u32.totalorder %s662_s11, %s958_s8 }
  0x50   : > { %p666_p1 = pneg %p665_p0  ;;  %p670_p6 = por %p669_p13, %p668_p4 }
  0x52   : > { %p672_p3 = por %p671_p10, %p670_p6 }
  0x54   : > { %p673_p5 = pnand %p672_p3, %p666_p1 }
  0x56   : > { %676 = shalt.err (!%p673_p5)
}
  0x57   : > { %s677_s30 = scalar_lea.vmem %s966_s26, 256  ;;  %s786_s6 = smov [#allocation2]  }
  0x58   : > { %p678_p9 = scmp.ne.s32.totalorder %s966_s26, %s677_s30  ;;  %s682_s7 = sshll.u32 %s786_s6, 4  ;;  %s683_s7 = int_to_ptr.vmem [resolvable:$false] %s682_s7 }
  0x59   : > { %s684_s21 = scalar_lea.vmem %s683_s7, 512  ;;  %p685_p7 = scmp.lt.s32.totalorder %s966_s26, %s683_s7 }
  0x5a   : > { %p680_p11 = pnand %p678_p9, %p664_p12  ;;  %p686_p4 = scmp.lt.s32.totalorder %s684_s21, %s677_s30 }
  0x5c   : > { %p681_p0 = pneg %p680_p11  ;;  %p687_p13 = por %p686_p4, %p685_p7 }
  0x5e   : > { %p688_p6 = pnand %p687_p13, %p681_p0 }
  0x60   : > { %691 = shalt.err (!%p688_p6)
}
  0x61   : > { %534 = dma.hbm_to_vmem [thread:$0]  (!%p962_p2), %s958_s8, 256, %s966_s26, %s175_s10  }
  0x62   : > { %197 = sbr.rel (%p865_p8) target bundleno = 350 (0x15e), region = 32  ;;  %s996_s11 = sand.u32 (!%p865_p8), 1, %s762_s13  }
  0x63   : > { %s494_s18 = sshll.u32 (!%p865_p8), %s996_s11, 4  ;;  %s200_s25 = scalar_lea.sflag (!%p865_p8), [#allocation3], %s996_s11 }
  0x64   : > { %s203_s27 = scalar_lea.vmem (!%p865_p8), [#allocation2], %s494_s18  ;;  %p1091_p7 = scmp.ne.s32.totalorder (!%p865_p8), %s1085_s22, 0 }
  0x69   : > { %745 = dma.done.wait (%p1091_p7), %s200_s25, 256  }
  0x6a   : > { %747 = vsyncadd (%p1091_p7), %s200_s25, 4294967040  ;;  %p1092_p12 = scmp.ne.s32.totalorder %s1083_s20, 0 }
  0x6c   : > { %749 = dma.done.wait (%p1092_p12), [#allocation6], 768  }
  0x6d   : > { %751 = vsyncadd (%p1092_p12), [#allocation6], 4294966528  ;;  %v787_v0 = vmov 0   ;;  %v238_v1 = vld [vmem:[%s203_s27 + $0x8] sm:$0xff]  ;;  %vm286_vm0 = vcmask 1043456   ;;  %v237_v2 = vld [vmem:[%s203_s27] sm:$0xff] }
  0x6e   : > { %325 = vmatprep.mubr.bf16.mxu0 %v787_v0  ;;  %335 = vmatprep.mubr.bf16.mxu1 %v787_v0  ;;  %v240_v3 = vpack.c.bf16 %v238_v1, %v238_v1  ;;  %v239_v4 = vpack.c.bf16 %v237_v2, %v237_v2  ;;  %v247_v5 = vld [vmem:[#allocation7 + $0x10] sm:$0xff]  ;;  %v605_v8 = vld [vmem:[#allocation5 + $0x8] sm:$0xff]   ;;  %v245_v9 = vld [vmem:[#allocation7] sm:$0xff]  ;;  %vm279_vm1 = vcmask 64512   ;;  %s497_s20 = sshll.u32 %s996_s11, 6  ;;  %s509_s8 = sshll.u32 %s770_s15, 10 }
  0x6f   : > { %603 = vset.pattern.permute.xlu1 %v787_v0  ;;  %602 = vset.pattern.permute.xlu0 %v787_v0  ;;  %v604_v7 = vld [vmem:[#allocation5] sm:$0xff]   ;;  %v248_v10 = vld [vmem:[#allocation7 + $0x18] sm:$0xff]  ;;  %v246_v11 = vld [vmem:[#allocation7 + $0x8] sm:$0xff]  ;;  %s1009_s22 = scalar_lea.vmem [#allocation8], %s497_s20  ;;  %s1020_s9 = scalar_lea.hbm %s1078_s3, %s509_s8 }
  0x70   : > { %500 = vmatprep.subr.msk.bf16.mxu0 %vm286_vm0, %v240_v3  ;;  %510 = vmatprep.subr.msk.bf16.mxu1 %vm286_vm0, %v240_v3  ;;  %v288_v6 = vsel %vm286_vm0, %v239_v4, 0  ;;  %s378_s24 = sshll.u32 %s1009_s22, 4  ;;  %s363_s10 = scalar_lea.sflag [#allocation4], %s996_s11  ;;  %s1013_s24 = int_to_ptr.vmem [resolvable:$true] %s378_s24 }
  0x71   : > { %294 = vmatpush1.bf16.msra.mxu0 %v288_v6  ;;  %511 = vmatpush1.bf16.msra.mxu1 %v288_v6  ;;  %s692_s29 = scalar_lea.vmem %s1013_s24, 1024  ;;  %p1093_p2 = scmp.ne.s32.totalorder %s1089_s28, 0 }
  0x72   : > { %261 = vperm.xlu1 %603, %v247_v5   ;;  %251 = vperm.xlu0 %602, %v245_v9   ;;  %p693_p8 = scmp.ne.s32.totalorder %s1013_s24, %s692_s29  ;;  %s788_s4 = smov [#allocation8]  }
  0x73   : > { %s696_s30 = sshll.u32 %s788_s4, 4  ;;  %s697_s30 = int_to_ptr.vmem [resolvable:$false] %s696_s30 }
  0x74   : > { %501 = vmatmul.mubr.msk.bf16.vlgmr.msra.gmra.mrb[0].mxu0 %vm279_vm1, %v604_v7  ;;  %502 = vmatmul.mubr.msk.bf16.vlgmr.msra.gmra.mrb[0].mxu1 %vm279_vm1, %v605_v8  ;;  %p694_p1 = pnand %p693_p8, %p1093_p2  ;;  %s698_s6 = scalar_lea.vmem %s697_s30, 2048 }
  0x75   : > { %p699_p3 = scmp.lt.s32.totalorder %s1013_s24, %s697_s30  ;;  %p700_p5 = scmp.lt.s32.totalorder %s698_s6, %s692_s29 }
  0x76   : > { %266 = vperm.xlu1 %603, %v248_v10   ;;  %256 = vperm.xlu0 %602, %v246_v11   ;;  %p695_p10 = pneg %p694_p1 }
  0x77   : > { %p701_p9 = por %p700_p5, %p699_p3 }
  0x79   : > { %p702_p11 = pnand %p701_p9, %p695_p10 }
  0xf1   : > { %v262_v12 = vpop.permute.xlu1 %261  ;;  %v252_v13 = vpop.permute.xlu0 %251 }
  0xf5   : > { %v267_v14 = vpop.permute.xlu1 %266  ;;  %v257_v15 = vpop.permute.xlu0 %256 }
 0x147   : > { %v327_v16 = vpop.f32.mrb[0].mxu0  ;;  %v337_v17 = vpop.f32.mrb[0].mxu1 }
 0x148   : > { %v328_v18 = vadd.f32 %v327_v16, %v252_v13  ;;  %v338_v19 = vadd.f32 %v337_v17, %v262_v12  ;;  %v329_v20 = vpop.f32.mrb[1].mxu0  ;;  %v339_v21 = vpop.f32.mrb[1].mxu1 }
 0x149   : > { %v330_v22 = vadd.f32 %v329_v20, %v252_v13  ;;  %v340_v23 = vadd.f32 %v339_v21, %v262_v12  ;;  %v331_v24 = vpop.f32.mrb[2].mxu0  ;;  %v341_v25 = vpop.f32.mrb[2].mxu1 }
 0x14a   : > { %v346_v26 = vmax.f32 %v328_v18, 0.0  ;;  %v350_v27 = vmax.f32 %v338_v19, 0.0  ;;  %v332_v28 = vadd.f32 %v331_v24, %v257_v15  ;;  %v342_v29 = vadd.f32 %v341_v25, %v267_v14  ;;  %v333_v30 = vpop.f32.mrb[3].mxu0  ;;  %v343_v31 = vpop.f32.mrb[3].mxu1 }
 0x14b   : > { %v347_v32 = vmax.f32 %v330_v22, 0.0  ;;  %v351_v33 = vmax.f32 %v340_v23, 0.0  ;;  %v334_v34 = vadd.f32 %v333_v30, %v257_v15  ;;  %v344_v35 = vadd.f32 %v343_v31, %v267_v14 }
 0x14c   : > { %354 = vst [vmem:[%s1009_s22] sm:$0xff] %v346_v26  ;;  %358 = vst [vmem:[%s1009_s22 + $0x20] sm:$0xff] %v350_v27  ;;  %v348_v36 = vmax.f32 %v332_v28, 0.0  ;;  %v352_v37 = vmax.f32 %v342_v29, 0.0 }
 0x14d   : > { %355 = vst [vmem:[%s1009_s22 + $0x8] sm:$0xff] %v347_v32  ;;  %359 = vst [vmem:[%s1009_s22 + $0x28] sm:$0xff] %v351_v33  ;;  %v349_v38 = vmax.f32 %v334_v34, 0.0  ;;  %v353_v39 = vmax.f32 %v344_v35, 0.0 }
 0x14e   : > { %356 = vst [vmem:[%s1009_s22 + $0x10] sm:$0xff] %v348_v36  ;;  %360 = vst [vmem:[%s1009_s22 + $0x30] sm:$0xff] %v352_v37 }
 0x14f   : > { %357 = vst [vmem:[%s1009_s22 + $0x18] sm:$0xff] %v349_v38  ;;  %361 = vst [vmem:[%s1009_s22 + $0x38] sm:$0xff] %v353_v39 }
 0x150   : > { %705 = shalt.err (!%p702_p11)
}
 0x151   : > { %s706_s7 = scalar_lea.hbm %s1020_s9, 1024  ;;  %s710_s25 = scalar_lea.hbm %s1078_s3, 2048 }
 0x152   : > { %p707_p0 = scmp.ne.s32.totalorder %s1020_s9, %s706_s7  ;;  %p711_p6 = scmp.lt.u32.totalorder %s1020_s9, %s1078_s3 }
 0x153   : > { %p712_p7 = scmp.lt.u32.totalorder %s710_s25, %s706_s7  ;;  %p714_p8 = scmp.lt.u32.totalorder %s706_s7, %s1020_s9 }
 0x154   : > { %p708_p4 = pnand %p707_p0, %p1093_p2 }
 0x155   : > { %p713_p12 = por %p712_p7, %p711_p6 }
 0x156   : > { %p709_p13 = pneg %p708_p4 }
 0x157   : > { %p715_p1 = por %p714_p8, %p713_p12 }
 0x159   : > { %p716_p10 = pnand %p715_p1, %p709_p13 }
 0x15b   : > { %719 = shalt.err (!%p716_p10)
}
 0x15c   : > { %s789_s22 = smov 256   ;;  %s790_s8 = smov 16  }
 0x15d   : > { %522 = dma.vmem_to_hbm [thread:$0]  (%p1093_p2), %s1013_s24, 1024, %s1020_s9, %s363_s10, %s789_s22, %s789_s22, %s790_s8  }
 0x15e PF: > { %s393_s15 = sand.u32 1, %s758_s12   ;;  %p1094_p3 = scmp.ne.s32.totalorder %s1086_s23, 0 }
 0x15f   : > { %p1095_p5 = scmp.ge.s32.totalorder %s778_s17, 2  ;;  %s394_s26 = scalar_lea.sflag [#allocation4], %s393_s15 }
 0x161   : > { %p536_p9 = pnand %p1095_p5, %p1094_p3 }
 0x163   : > { %753 = dma.done.wait (!%p536_p9), %s394_s26, 1024  }
 0x164   : > { %755 = vsyncadd (!%p536_p9), %s394_s26, 4294966272  ;;  %s20_s17 = sadd.s32 1, %s778_s17   ;;  %s1096_s12 = smov %s762_s13 }
 0x165   : > { %p17_p11 = scmp.ge.s32.totalorder %s20_s17, 4   ;;  %s1097_s13 = smov %s766_s14 }
 0x166   : > { %s1098_s14 = smov %s953_s5  ;;  %s1099_s15 = smov %s774_s16 }
 0x167   : > { %s1100_s16 = smov %s1102_s19  ;;  %19 = sbr.rel (!%p17_p11) target bundleno = 7 (0x7), region = 85 }
 0x16e   :  { %399 = vsyncpa [#allocation3], 1 }
 0x16f   :  { %401 = vsyncpa [#allocation3 + $0x1], 1 }
 0x170   :  { %402 = vsyncpa [#allocation6], 1 }
 0x171   :  { %403 = vsyncpa [#allocation4], 1 }
 0x172   :  { %405 = vsyncpa [#allocation4 + $0x1], 1 }

</bundles_post_ra>
